<compile_context>
chip_gen: v7x
topology: tpu7x:2x2x1
jax: 0.10.0
libtpu: 0.0.40
codegen_flags: <defaults>
</compile_context>

<pallas_src>
import numpy as np
import jax
import jax.numpy as jnp
from jax.experimental import pallas as pl
from jax.experimental.pallas import tpu as pltpu

N_SENSORS = 180
K1, S1, P1 = 45, 15, 15                         # conv1: kernel / stride / circular pad
T_OUT = (N_SENSORS + 2 * P1 - K1) // S1 + 1     # = 12 time steps after conv1
C1, C2, C3 = 3, 2, 1                            # output_channels of the three convs

MAX_TB = 2048                                   # rows per batch tile (VMEM-friendly)


# ----------------------------- Pallas kernel ------------------------------- #
def lidar_kernel(x_ref, a1_ref, b1_ref, a2_ref, b2_ref, a3l_ref, b3l_ref, o_ref):
    x = x_ref[...]                                                     # (TB, 180)
    # conv1 (circular pad 15, k=45, stride=15) as banded 180x36 matmul + ReLU
    h1 = jnp.dot(x, a1_ref[...], preferred_element_type=jnp.float32) + b1_ref[...]
    h1 = jnp.maximum(h1, 0.0)                                          # (TB, 36)
    # conv2 (circular pad 1, k=3, stride=1) as banded 36x24 matmul + ReLU
    h2 = jnp.dot(h1, a2_ref[...], preferred_element_type=jnp.float32) + b2_ref[...]
    h2 = jnp.maximum(h2, 0.0)                                          # (TB, 24)
    # conv3 fused with Linear(12, 1) into one 24x1 matmul (no ReLU in between),
    # then final ReLU.
    out = jnp.dot(h2, a3l_ref[...], preferred_element_type=jnp.float32) + b3l_ref[...]
    o_ref[...] = jnp.maximum(out, 0.0)                                 # (TB, 1)


def _round_up(x, m):
    return (x + m - 1) // m * m


def lidar_forward(x, a1, bb1, a2, bb2, a3l, b3l):
    B = x.shape[0]
    x2 = x.reshape(B, N_SENSORS).astype(jnp.float32)   # squeeze channel dim (glue)

    TB = min(MAX_TB, _round_up(B, 8))                  # sublane-aligned batch tile
    B_pad = _round_up(B, TB)
    if B_pad != B:
        x2 = jnp.pad(x2, ((0, B_pad - B), (0, 0)))
    grid = (B_pad // TB,)

    weight_bytes = sum(int(np.prod(a.shape)) * 4 for a in (a1, bb1, a2, bb2, a3l, b3l))
    cost = pl.CostEstimate(
        flops=2 * B_pad * (N_SENSORS * T_OUT * C1
                           + T_OUT * C1 * T_OUT * C2
                           + T_OUT * C2 * 1),
        transcendentals=0,
        bytes_accessed=B_pad * (N_SENSORS + 1) * 4 + weight_bytes,
    )

    out = pl.pallas_call(
        lidar_kernel,
        out_shape=jax.ShapeDtypeStruct((B_pad, 1), jnp.float32),
        grid=grid,
        in_specs=[
            pl.BlockSpec((TB, N_SENSORS), lambda i: (i, 0)),   # streamed batch tile
            pl.BlockSpec(a1.shape, lambda i: (0, 0)),          # weights: VMEM-resident
            pl.BlockSpec(bb1.shape, lambda i: (0, 0)),
            pl.BlockSpec(a2.shape, lambda i: (0, 0)),
            pl.BlockSpec(bb2.shape, lambda i: (0, 0)),
            pl.BlockSpec(a3l.shape, lambda i: (0, 0)),
            pl.BlockSpec(b3l.shape, lambda i: (0, 0)),
        ],
        out_specs=pl.BlockSpec((TB, 1), lambda i: (i, 0)),
        compiler_params=pltpu.CompilerParams(
            dimension_semantics=("parallel",)),                # megacore split on v7x
        cost_estimate=cost,
    )(x2, a1, bb1, a2, bb2, a3l, b3l)
    return out[:B]


lidar_forward = jax.jit(lidar_forward)


# --------------------- deterministic parameter creation -------------------- #
def build_params(key):
    ks = jax.random.split(key, 8)

    def u(k, shape, fan_in):
        b = 1.0 / np.sqrt(fan_in)
        return np.asarray(jax.random.uniform(k, shape, jnp.float32, -b, b))

    w1 = u(ks[0], (C1, 1, K1), 1 * K1)   # Conv1d(1, 3, 45)
    b1 = u(ks[1], (C1,), 1 * K1)
    w2 = u(ks[2], (C2, C1, 3), C1 * 3)   # Conv1d(3, 2, 3)
    b2 = u(ks[3], (C2,), C1 * 3)
    w3 = u(ks[4], (C3, C2, 3), C2 * 3)   # Conv1d(2, 1, 3)
    b3 = u(ks[5], (C3,), C2 * 3)
    wl = u(ks[6], (1, T_OUT), T_OUT)     # Linear(12, 1)
    bl = u(ks[7], (1,), T_OUT)
    return w1, b1, w2, b2, w3, b3, wl, bl


def conv_as_matmul_params(w1, b1, w2, b2, w3, b3, wl, bl):
    """Rearrange conv weights into banded matrices; fuse conv3 with the Linear head."""
    a1 = np.zeros((N_SENSORS, T_OUT * C1), np.float32)
    for t in range(T_OUT):
        for c in range(C1):
            for k in range(K1):
                i = (S1 * t - P1 + k) % N_SENSORS
                a1[i, t * C1 + c] += w1[c, 0, k]
    bb1 = np.tile(b1, T_OUT)[None, :]                       # (1, 36), index t*3+c

    a2 = np.zeros((T_OUT * C1, T_OUT * C2), np.float32)
    for t in range(T_OUT):
        for c_out in range(C2):
            for c_in in range(C1):
                for k in range(3):
                    ti = (t - 1 + k) % T_OUT
                    a2[ti * C1 + c_in, t * C2 + c_out] += w2[c_out, c_in, k]
    bb2 = np.tile(b2, T_OUT)[None, :]                       # (1, 24)

    a3 = np.zeros((T_OUT * C2, T_OUT * C3), np.float32)
    for t in range(T_OUT):
        for c_in in range(C2):
            for k in range(3):
                ti = (t - 1 + k) % T_OUT
                a3[ti * C2 + c_in, t] += w3[0, c_in, k]
    bb3 = np.tile(b3, T_OUT)[None, :]                       # (1, 12)

    wl_t = wl.T.astype(np.float32)                          # (12, 1)
    bl2 = bl.reshape(1, 1).astype(np.float32)               # (1, 1)

    # Fold conv3 + Linear (no ReLU in between => exact linear composition).
    a3l = (a3 @ wl_t).astype(np.float32)                    # (24, 1)
    b3l = (bb3 @ wl_t + bl2).astype(np.float32)             # (1, 1)

    return tuple(jnp.asarray(m, jnp.float32)
                 for m in (a1, bb1, a2, bb2, a3l, b3l))


# -------------------------- numpy reference (torch semantics) -------------- #
def ref_forward(x, w1, b1, w2, b2, w3, b3, wl, bl):
    x = np.asarray(x, np.float64)                                    # (B,1,180)
    B = x.shape[0]
    xp = np.concatenate([x[:, :, -P1:], x, x[:, :, :P1]], axis=2)    # circular pad
    h1 = np.zeros((B, C1, T_OUT))
    for t in range(T_OUT):
        win = xp[:, 0, S1 * t: S1 * t + K1]
        for c in range(C1):
            h1[:, c, t] = win @ w1[c, 0] + b1[c]
    h1 = np.maximum(h1, 0)
    h1p = np.concatenate([h1[:, :, -1:], h1, h1[:, :, :1]], axis=2)
    h2 = np.zeros((B, C2, T_OUT))
    for t in range(T_OUT):
        win = h1p[:, :, t:t + 3]
        for c in range(C2):
            h2[:, c, t] = np.einsum('bck,ck->b', win, w2[c]) + b2[c]
    h2 = np.maximum(h2, 0)
    h2p = np.concatenate([h2[:, :, -1:], h2, h2[:, :, :1]], axis=2)
    h3 = np.zeros((B, C3, T_OUT))
    for t in range(T_OUT):
        win = h2p[:, :, t:t + 3]
        h3[:, 0, t] = np.einsum('bck,ck->b', win, w3[0]) + b3[0]
    flat = h3.reshape(B, T_OUT)
    return np.maximum(flat @ wl.T + bl[None, :], 0)


if __name__ == "__main__":
    key = jax.random.PRNGKey(0)
    kx, kp, kx2 = jax.random.split(key, 3)

    w1, b1, w2, b2, w3, b3, wl, bl = build_params(kp)
    params = conv_as_matmul_params(w1, b1, w2, b2, w3, b3, wl, bl)

    # Small batch (B=2, as in the spec's expected usage).
    B = 2
    x = jax.random.uniform(kx, (B, 1, N_SENSORS), jnp.float32)       # lidar scans
    y = jax.block_until_ready(lidar_forward(x, *params))
    y_ref = ref_forward(np.asarray(x), w1, b1, w2, b2, w3, b3, wl, bl)
    assert y.shape == (B, 1)
    np.testing.assert_allclose(np.asarray(y), y_ref, rtol=1e-2, atol=1e-2)

    # Batch not a multiple of the tile / sublane size (exercises the pad path).
    B2 = 37
    x_b = jax.random.uniform(kx2, (B2, 1, N_SENSORS), jnp.float32)
    y_b = jax.block_until_ready(lidar_forward(x_b, *params))
    y_b_ref = ref_forward(np.asarray(x_b), w1, b1, w2, b2, w3, b3, wl, bl)
    assert y_b.shape == (B2, 1)
    np.testing.assert_allclose(np.asarray(y_b), y_b_ref, rtol=1e-2, atol=1e-2)

    print("KERNEL_OK")
</pallas_src>

<mosaic_0001>
module attributes {stable_mosaic.version = 11 : i64} {
  func.func @lidar_kernel(%arg0: i32, %arg1: memref<8x180xf32, #tpu.memory_space<vmem>>, %arg2: memref<180x36xf32, #tpu.memory_space<vmem>>, %arg3: memref<1x36xf32, #tpu.memory_space<vmem>>, %arg4: memref<36x24xf32, #tpu.memory_space<vmem>>, %arg5: memref<1x24xf32, #tpu.memory_space<vmem>>, %arg6: memref<24x1xf32, #tpu.memory_space<vmem>>, %arg7: memref<1x1xf32, #tpu.memory_space<vmem>>, %arg8: memref<8x1xf32, #tpu.memory_space<vmem>>) attributes {dimension_semantics = [#tpu.dimension_semantics<parallel>], iteration_bounds = array<i64: 1>, scalar_prefetch = 0 : i64, scratch_operands = 0 : i64, tpu.core_type = #tpu.core_type<tc>, window_params = [{transform_indices = @transform_0, window_bounds = array<i64: 8, 180>}, {pipeline_mode = #tpu.pipeline_mode<synchronous>, transform_indices = @transform_1, window_bounds = array<i64: 180, 36>}, {pipeline_mode = #tpu.pipeline_mode<synchronous>, transform_indices = @transform_2, window_bounds = array<i64: 1, 36>}, {pipeline_mode = #tpu.pipeline_mode<synchronous>, transform_indices = @transform_3, window_bounds = array<i64: 36, 24>}, {pipeline_mode = #tpu.pipeline_mode<synchronous>, transform_indices = @transform_4, window_bounds = array<i64: 1, 24>}, {pipeline_mode = #tpu.pipeline_mode<synchronous>, transform_indices = @transform_5, window_bounds = array<i64: 24, 1>}, {pipeline_mode = #tpu.pipeline_mode<synchronous>, transform_indices = @transform_6, window_bounds = array<i64: 1, 1>}, {transform_indices = @transform_7, window_bounds = array<i64: 8, 1>}]} {
    %c0 = arith.constant 0 : index
    %c0_0 = arith.constant 0 : index
    %0 = vector.load %arg1[%c0, %c0_0] : memref<8x180xf32, #tpu.memory_space<vmem>>, vector<8x180xf32>
    %c0_1 = arith.constant 0 : index
    %c0_2 = arith.constant 0 : index
    %1 = vector.load %arg2[%c0_1, %c0_2] : memref<180x36xf32, #tpu.memory_space<vmem>>, vector<180x36xf32>
    %cst = arith.constant dense<0.000000e+00> : vector<8x36xf32>
    %2 = tpu.matmul %0, %1, %cst {dimension_numbers = #tpu.dot_dimension_numbers<[1], [0], [0], [1], [0, 0, 1, 1], [], []>} : vector<8x180xf32>, vector<180x36xf32>, vector<8x36xf32> -> vector<8x36xf32>
    %c0_3 = arith.constant 0 : index
    %c0_4 = arith.constant 0 : index
    %3 = vector.load %arg3[%c0_3, %c0_4] : memref<1x36xf32, #tpu.memory_space<vmem>>, vector<1x36xf32>
    %4 = vector.broadcast %3 : vector<1x36xf32> to vector<8x36xf32>
    %5 = arith.addf %2, %4 : vector<8x36xf32>
    %cst_5 = arith.constant 0.000000e+00 : f32
    %6 = vector.broadcast %cst_5 : f32 to vector<8x36xf32>
    %7 = arith.maximumf %5, %6 : vector<8x36xf32>
    %c0_6 = arith.constant 0 : index
    %c0_7 = arith.constant 0 : index
    %8 = vector.load %arg4[%c0_6, %c0_7] : memref<36x24xf32, #tpu.memory_space<vmem>>, vector<36x24xf32>
    %cst_8 = arith.constant dense<0.000000e+00> : vector<8x24xf32>
    %9 = tpu.matmul %7, %8, %cst_8 {dimension_numbers = #tpu.dot_dimension_numbers<[1], [0], [0], [1], [0, 0, 1, 1], [], []>} : vector<8x36xf32>, vector<36x24xf32>, vector<8x24xf32> -> vector<8x24xf32>
    %c0_9 = arith.constant 0 : index
    %c0_10 = arith.constant 0 : index
    %10 = vector.load %arg5[%c0_9, %c0_10] : memref<1x24xf32, #tpu.memory_space<vmem>>, vector<1x24xf32>
    %11 = vector.broadcast %10 : vector<1x24xf32> to vector<8x24xf32>
    %12 = arith.addf %9, %11 : vector<8x24xf32>
    %cst_11 = arith.constant 0.000000e+00 : f32
    %13 = vector.broadcast %cst_11 : f32 to vector<8x24xf32>
    %14 = arith.maximumf %12, %13 : vector<8x24xf32>
    %c0_12 = arith.constant 0 : index
    %c0_13 = arith.constant 0 : index
    %15 = vector.load %arg6[%c0_12, %c0_13] : memref<24x1xf32, #tpu.memory_space<vmem>>, vector<24x1xf32>
    %cst_14 = arith.constant dense<0.000000e+00> : vector<8x1xf32>
    %16 = tpu.matmul %14, %15, %cst_14 {dimension_numbers = #tpu.dot_dimension_numbers<[1], [0], [0], [1], [0, 0, 1, 1], [], []>} : vector<8x24xf32>, vector<24x1xf32>, vector<8x1xf32> -> vector<8x1xf32>
    %c0_15 = arith.constant 0 : index
    %c0_16 = arith.constant 0 : index
    %17 = vector.load %arg7[%c0_15, %c0_16] : memref<1x1xf32, #tpu.memory_space<vmem>>, vector<1x1xf32>
    %18 = vector.broadcast %17 : vector<1x1xf32> to vector<8x1xf32>
    %19 = arith.addf %16, %18 : vector<8x1xf32>
    %cst_17 = arith.constant 0.000000e+00 : f32
    %20 = vector.broadcast %cst_17 : f32 to vector<8x1xf32>
    %21 = arith.maximumf %19, %20 : vector<8x1xf32>
    %c0_18 = arith.constant 0 : index
    %c0_19 = arith.constant 0 : index
    %22 = vector.load %arg8[%c0_18, %c0_19] : memref<8x1xf32, #tpu.memory_space<vmem>>, vector<8x1xf32>
    tpu.vector_store %arg8[%c0_18, %c0_19], %21 {strides = array<i32>} : memref<8x1xf32, #tpu.memory_space<vmem>>, vector<8x1xf32>,
    return
  }
  func.func @transform_0(%arg0: i32) -> (i32, i32) {
    %c0_i32 = arith.constant 0 : i32
    %c0_i32_0 = arith.constant 0 : i32
    return %arg0, %c0_i32 : i32, i32
  }
  func.func @transform_1(%arg0: i32) -> (i32, i32) {
    %c0_i32 = arith.constant 0 : i32
    %c0_i32_0 = arith.constant 0 : i32
    %c0_i32_1 = arith.constant 0 : i32
    return %c0_i32, %c0_i32_0 : i32, i32
  }
  func.func @transform_2(%arg0: i32) -> (i32, i32) {
    %c0_i32 = arith.constant 0 : i32
    %c0_i32_0 = arith.constant 0 : i32
    %c0_i32_1 = arith.constant 0 : i32
    return %c0_i32, %c0_i32_0 : i32, i32
  }
  func.func @transform_3(%arg0: i32) -> (i32, i32) {
    %c0_i32 = arith.constant 0 : i32
    %c0_i32_0 = arith.constant 0 : i32
    %c0_i32_1 = arith.constant 0 : i32
    return %c0_i32, %c0_i32_0 : i32, i32
  }
  func.func @transform_4(%arg0: i32) -> (i32, i32) {
    %c0_i32 = arith.constant 0 : i32
    %c0_i32_0 = arith.constant 0 : i32
    %c0_i32_1 = arith.constant 0 : i32
    return %c0_i32, %c0_i32_0 : i32, i32
  }
  func.func @transform_5(%arg0: i32) -> (i32, i32) {
    %c0_i32 = arith.constant 0 : i32
    %c0_i32_0 = arith.constant 0 : i32
    %c0_i32_1 = arith.constant 0 : i32
    return %c0_i32, %c0_i32_0 : i32, i32
  }
  func.func @transform_6(%arg0: i32) -> (i32, i32) {
    %c0_i32 = arith.constant 0 : i32
    %c0_i32_0 = arith.constant 0 : i32
    %c0_i32_1 = arith.constant 0 : i32
    return %c0_i32, %c0_i32_0 : i32, i32
  }
  func.func @transform_7(%arg0: i32) -> (i32, i32) {
    %c0_i32 = arith.constant 0 : i32
    %c0_i32_0 = arith.constant 0 : i32
    return %arg0, %c0_i32 : i32, i32
  }
}

</mosaic_0001>

<bundles_post_ra>
// kernel: lidar_forward.1
= control target key start
LH: loop header
LB: loop body
LE: loop exit
PB: predicated region body
PF: predicated region fallthrough
CT: control target
= control target key end

     0   :  { %v405_v0 = vmov 0.0|0.0   ;;  %vm60_vm0 = vcmask 424960   ;;  %v406_v38 = vmov 0.0   ;;  %vm64_vm1 = vcmask 1043456   ;;  %s575_s1 = inlined_call_operand.vmem [shape: f32[180,36], index: 1, kind: input, shape index: {}]   ;;  %s576_s0 = inlined_call_operand.vmem [shape: f32[8,180], index: 0, kind: input, shape index: {}]   ;;  %s577_s3 = inlined_call_operand.vmem [shape: f32[36,24], index: 3, kind: input, shape index: {}]   ;;  %s578_s2 = inlined_call_operand.vmem [shape: f32[1,36], index: 2, kind: input, shape index: {}]   ;;  %s579_s5 = inlined_call_operand.vmem [shape: f32[24,1], index: 5, kind: input, shape index: {}]   ;;  %s580_s6 = inlined_call_operand.<no memory space> [shape: f32[1,1], index: 6, kind: input, shape index: {}]   ;;  %s581_s4 = inlined_call_operand.vmem [shape: f32[1,24], index: 4, kind: input, shape index: {}]   ;;  %s582_s7 = inlined_call_operand.vmem [shape: f32[8,1], index: 7, kind: output, shape index: {}]  }
   0x1   :  { %360 = vmatprep.subr.bf16.mxu0 %v405_v0  ;;  %v30_v1 = vld [vmem:[%s575_s1] sm:$0xff]  ;;  %v31_v2 = vld [vmem:[%s575_s1 + $0x8] sm:$0xff]  ;;  %v32_v3 = vld [vmem:[%s575_s1 + $0x10] sm:$0xff]  ;;  %393 = vmatprep.subr.bf16.mxu1 %v405_v0  ;;  %vm407_vm2 = vmmov 0   ;;  %vm151_vm3 = vcmask 293888   ;;  %v12_v54 = vstv %s580_s6  ;;  %vm239_vm4 = vcmask 195584  }
   0x2   :  { %v361_v4 = vpack.c.bf16 %v31_v2, %v30_v1  ;;  %v33_v5 = vld [vmem:[%s575_s1 + $0x18] sm:$0xff]  ;;  %v34_v7 = vld [vmem:[%s575_s1 + $0x20] sm:$0xff]  ;;  %v35_v8 = vld [vmem:[%s575_s1 + $0x28] sm:$0xff]  ;;  %348 = vmatprep.mubr.msk.f32.mxu1 %vm407_vm2, %v406_v38  ;;  %13 = vst [vmem:[#allocation2] sm:$0x1] %v12_v54  ;;  %vm314_vm5 = vcmask 7168  }
   0x3   :  { %v364_v6 = vpack.c.bf16 %v33_v5, %v32_v3  ;;  %v367_v9 = vpack.c.bf16 %v35_v8, %v34_v7  ;;  %v36_v10 = vld [vmem:[%s575_s1 + $0x30] sm:$0xff]  ;;  %v29_v11 = vld [vmem:[%s576_s0 + $0x8] sm:$0xff]  ;;  %v37_v12 = vld [vmem:[%s575_s1 + $0x38] sm:$0xff] }
   0x4   :  { %362 = vmatpush1.bf16.msra.mxu0 %v361_v4  ;;  %322 = vmatprep.mubr.msk.f32.mxu0 %vm60_vm0, %v29_v11  ;;  %v139_v13 = vld [vmem:[%s577_s3] sm:$0xff]  ;;  %v140_v14 = vld [vmem:[%s577_s3 + $0x8] sm:$0xff]  ;;  %v370_v16 = vpack.c.bf16 %v37_v12, %v36_v10  ;;  %v40_v20 = vld [vmem:[%s575_s1 + $0x50] sm:$0xff] }
   0x5   :  { %363 = vmatprep.subr.bf16.mxu0 %v405_v0  ;;  %v394_v15 = vpack.c.bf16 %v140_v14, %v139_v13  ;;  %v38_v17 = vld [vmem:[%s575_s1 + $0x40] sm:$0xff]  ;;  %v39_v18 = vld [vmem:[%s575_s1 + $0x48] sm:$0xff]  ;;  %v41_v21 = vld [vmem:[%s575_s1 + $0x58] sm:$0xff] }
   0x6   :  { %v373_v19 = vpack.c.bf16 %v39_v18, %v38_v17  ;;  %v376_v22 = vpack.c.bf16 %v41_v21, %v40_v20  ;;  %v42_v23 = vld [vmem:[%s575_s1 + $0x60] sm:$0xff]  ;;  %v43_v24 = vld [vmem:[%s575_s1 + $0x68] sm:$0xff]  ;;  %v44_v26 = vld [vmem:[%s575_s1 + $0x70] sm:$0xff] }
   0x7   :  { %395 = vmatpush3.bf16.msra.mxu1 %v394_v15  ;;  %v379_v25 = vpack.c.bf16 %v43_v24, %v42_v23  ;;  %v45_v27 = vld [vmem:[%s575_s1 + $0x78] sm:$0xff]  ;;  %v46_v29 = vld [vmem:[%s575_s1 + $0x80] sm:$0xff]  ;;  %v47_v30 = vld [vmem:[%s575_s1 + $0x88] sm:$0xff] }
   0x8   :  { %365 = vmatpush1.bf16.msra.mxu0 %v364_v6  ;;  %396 = vmatprep.subr.bf16.mxu1 %v405_v0  ;;  %v382_v28 = vpack.c.bf16 %v45_v27, %v44_v26  ;;  %v385_v31 = vpack.c.bf16 %v47_v30, %v46_v29  ;;  %v48_v32 = vld [vmem:[%s575_s1 + $0x90] sm:$0xff]  ;;  %v49_v33 = vld [vmem:[%s575_s1 + $0x98] sm:$0xff]  ;;  %v50_v35 = vld [vmem:[%s575_s1 + $0xa0] sm:$0xff] }
   0x9   :  { %366 = vmatprep.subr.bf16.mxu0 %v405_v0  ;;  %v388_v34 = vpack.c.bf16 %v49_v33, %v48_v32  ;;  %v51_v36 = vld [vmem:[%s575_s1 + $0xa8] sm:$0xff]  ;;  %v52_v39 = vld [vmem:[%s575_s1 + $0xb0] sm:$0xf]  ;;  %v28_v40 = vld [vmem:[%s576_s0] sm:$0xff] }
   0xa   :  { %v391_v37 = vpack.c.bf16 %v51_v36, %v50_v35  ;;  %v141_v41 = vld [vmem:[%s577_s3 + $0x10] sm:$0xff]  ;;  %v142_v42 = vld [vmem:[%s577_s3 + $0x18] sm:$0xff]  ;;  %v143_v44 = vld [vmem:[%s577_s3 + $0x20] sm:$0xf] }
   0xb   :  { %v397_v43 = vpack.c.bf16 %v142_v42, %v141_v41  ;;  %v320_v45 = vld [vmem:[%s578_s2] ss:$0 sm:$0xff]  ;;  %v230_v47 = vld [vmem:[%s579_s5 + $0x8] sm:$0xff]  ;;  %v231_v53 = vld [vmem:[%s579_s5 + $0x10] sm:$0xff] }
   0xc   :  { %368 = vmatpush1.bf16.msra.mxu0 %v367_v9  ;;  %v229_v46 = vld [vmem:[%s579_s5] sm:$0xff] }
   0xd   :  { %369 = vmatprep.subr.bf16.mxu0 %v405_v0  ;;  %398 = vmatpush3.bf16.msra.mxu1 %v397_v43  ;;  %v400_v51 = vpack.c.bf16 %v230_v47, %v229_v46  ;;  %v323_v55 = vld [vmem:[%s581_s4] ss:$0 sm:$0xff] }
   0xe   :  { %346 = vmatprep.subr.mxu1 %v406_v38  ;;  %v326_v60 = vld [vmem:[#allocation2] ss:$0 sm:$0xff] }
  0x10   :  { %371 = vmatpush1.bf16.msra.mxu0 %v370_v16 }
  0x11   :  { %372 = vmatprep.subr.bf16.mxu0 %v405_v0  ;;  %347 = vmatpush3.msk.msra.mxu1 %vm64_vm1, %v143_v44 }
  0x12   :  { %399 = vmatprep.subr.bf16.mxu1 %v405_v0 }
  0x14   :  { %374 = vmatpush1.bf16.msra.mxu0 %v373_v19 }
  0x15   :  { %375 = vmatprep.subr.bf16.mxu0 %v405_v0 }
  0x18   :  { %377 = vmatpush1.bf16.msra.mxu0 %v376_v22 }
  0x19   :  { %378 = vmatprep.subr.bf16.mxu0 %v405_v0 }
  0x1c   :  { %380 = vmatpush1.bf16.msra.mxu0 %v379_v25 }
  0x1d   :  { %381 = vmatprep.subr.bf16.mxu0 %v405_v0 }
  0x20   :  { %383 = vmatpush1.bf16.msra.mxu0 %v382_v28 }
  0x21   :  { %384 = vmatprep.subr.bf16.mxu0 %v405_v0 }
  0x24   :  { %386 = vmatpush1.bf16.msra.mxu0 %v385_v31 }
  0x25   :  { %387 = vmatprep.subr.bf16.mxu0 %v405_v0 }
  0x28   :  { %389 = vmatpush1.bf16.msra.mxu0 %v388_v34 }
  0x29   :  { %390 = vmatprep.subr.bf16.mxu0 %v405_v0 }
  0x2c   :  { %392 = vmatpush1.bf16.msra.mxu0 %v391_v37 }
  0x2d   :  { %112 = vmatprep.subr.mxu0 %v406_v38 }
  0x30   :  { %321 = vmatpush1.msk.msra.mxu0 %vm64_vm1, %v52_v39 }
  0x31   :  { %133 = vmatmul.mubr.f32.vlgmr.msra.gmra.mrb[0].mxu0 %v28_v40 }
 0x104   :  { %v134_v48 = vpop.f32.mrb[0].mxu0 }
 0x105   :  { %v135_v49 = vadd.f32 %v320_v45, %v134_v48  ;;  %v136_v50 = vpop.f32.mrb[1].mxu0 }
 0x107   :  { %v138_v52 = vmax.f32 %v135_v49, 0.0 }
 0x109   :  { %349 = vmatmul.mubr.msk.f32.vlgmr.msra.gmra.mrb[0].mxu1 %vm151_vm3, %v138_v52 }
 0x10a   :  { %401 = vmatpush3.bf16.msra.mxu1 %v400_v51  ;;  %357 = vmatprep.mubr.msk.f32.mxu1 %vm407_vm2, %v406_v38 }
 0x10b   :  { %355 = vmatprep.subr.mxu1 %v406_v38 }
 0x10e   :  { %356 = vmatpush3.msra.mxu1 %v231_v53 }
 0x1dc   :  { %v224_v56 = vpop.f32.mrb[0].mxu1 }
 0x1dd   :  { %v225_v57 = vadd.f32 %v323_v55, %v224_v56  ;;  %v350_v58 = vpop.f32.mrb[1].mxu1 }
 0x1df   :  { %v228_v59 = vmax.f32 %v225_v57, 0.0 }
 0x1e1   :  { %358 = vmatmul.mubr.msk.f32.vlgmr.msra.gmra.mrb[2].mxu1 %vm239_vm4, %v228_v59 }
 0x2b4   :  { %v309_v61 = vpop.f32.mrb[2].mxu1 }
 0x2b5   :  { %v310_v62 = vadd.f32 %v326_v60, %v309_v61  ;;  %v359_v63 = vpop.f32.mrb[3].mxu1 }
 0x2b7   :  { %v313_v0 = vmax.f32 %v310_v62, 0.0 }
 0x2b9   :  { %315 = vst.msk [vmem:[%s582_s7] sm:$0xff] %vm314_vm5, %v313_v0 }

</bundles_post_ra>
